<compile_context>
chip_gen: v7x
topology: tpu7x:2x2x1
jax: 0.10.0
libtpu: 0.0.40
codegen_flags: <defaults>
</compile_context>

<pallas_src>
import functools

import jax
import jax.numpy as jnp
from jax import lax
from jax.experimental import pallas as pl
from jax.experimental.pallas import tpu as pltpu

LANE = 128


def _round_up(x, m):
    return ((x + m - 1) // m) * m


def _device_config():
    """(tile, vmem_limit_bytes) per TPU generation."""
    kind = ""
    try:
        kind = jax.devices()[0].device_kind.lower()
    except Exception:
        pass
    if "v5" in kind or "v6" in kind:
        # 128 MiB VMEM parts: larger tiles amortize per-grid-step overhead.
        return 512, 96 * 1024 * 1024
    if "v7" in kind:
        # 64 MiB VMEM: keep tiles modest.
        return 256, 48 * 1024 * 1024
    return 256, None


def _compiler_params(dims, vmem_limit):
    kw = dict(dimension_semantics=dims)
    if vmem_limit is not None:
        kw["vmem_limit_bytes"] = vmem_limit
    return pltpu.CompilerParams(**kw)


# ---------------------------------------------------------------------------
# Shared epilogue: fused linear (+bias, +relu), aggregate, optional L2 norm
# ---------------------------------------------------------------------------
def _epilogue(lhs, w_ref, b_ref, o_ref, *, num_hops, fout, aggr, act_relu,
              apply_l2norm):
    # One MXU dot against the block-diagonal per-hop weight emits the hop
    # concat directly (lane dense).  relu is elementwise, so applying it after
    # the fused dot equals applying it per hop.
    h = jnp.dot(lhs, w_ref[...], preferred_element_type=jnp.float32)
    h = h + b_ref[...]
    if act_relu:
        h = jnp.maximum(h, 0.0)
    if aggr == "concat":
        out = h
    else:  # 'mean': the reference sums the hop outputs without dividing.
        out = h[:, :fout]
        for r in range(1, num_hops):
            out = out + h[:, r * fout:(r + 1) * fout]
    if apply_l2norm:
        # F.normalize(h, p=2, dim=1) == h / max(||h||_2, 1e-12); padded zero
        # columns contribute nothing to the norm.
        ssq = jnp.sum(out * out, axis=1, keepdims=True)
        out = out * lax.rsqrt(jnp.maximum(ssq, 1e-24))
    o_ref[...] = out.astype(o_ref.dtype)


# ---------------------------------------------------------------------------
# Pallas kernels
# ---------------------------------------------------------------------------
def _gcn_order1_kernel(x_ref, a_ref, h_ref, d_ref, w_ref, b_ref, o_ref,
                       acc_ref, *, fout, aggr, act_relu, apply_l2norm):
    # grid = (row tiles, K tiles).  bf16 x bf16 A@H with an f32 accumulator in
    # VMEM scratch; D-scale + fused linear/concat/relu/L2 epilogue + the
    # lane-dense store only run on the last K step.
    k = pl.program_id(1)

    @pl.when(k == 0)
    def _():
        acc_ref[...] = jnp.zeros_like(acc_ref)

    acc_ref[...] += jnp.dot(a_ref[...], h_ref[...],
                            preferred_element_type=jnp.float32)

    @pl.when(k == pl.num_programs(1) - 1)
    def _():
        x = x_ref[...]
        agg = (acc_ref[...] * d_ref[...]).astype(x.dtype)
        lhs = jnp.concatenate([x, agg], axis=1)  # lane aligned (width % 128 == 0)
        _epilogue(lhs, w_ref, b_ref, o_ref, num_hops=2, fout=fout, aggr=aggr,
                  act_relu=act_relu, apply_l2norm=apply_l2norm)


def _gcn_transform_kernel(*refs, num_hops, fout, aggr, act_relu,
                          apply_l2norm):
    # order == 0 (pure linear) and the order >= 2 fallback (hop features
    # already materialized, passed as separate row-tile inputs).
    hop_refs = refs[:num_hops]
    w_ref, b_ref, o_ref = refs[num_hops:num_hops + 3]
    if num_hops == 1:
        lhs = hop_refs[0][...]
    else:
        lhs = jnp.concatenate([r[...] for r in hop_refs], axis=1)
    _epilogue(lhs, w_ref, b_ref, o_ref, num_hops=num_hops, fout=fout,
              aggr=aggr, act_relu=act_relu, apply_l2norm=apply_l2norm)


def _propagate_kernel(a_ref, h_ref, d_ref, o_ref, acc_ref):
    # One hop of message passing, K-tiled:  O_row = (A_row @ H) * D_row.
    k = pl.program_id(1)

    @pl.when(k == 0)
    def _():
        acc_ref[...] = jnp.zeros_like(acc_ref)

    acc_ref[...] += jnp.dot(a_ref[...], h_ref[...],
                            preferred_element_type=jnp.float32)

    @pl.when(k == pl.num_programs(1) - 1)
    def _():
        o_ref[...] = (acc_ref[...] * d_ref[...]).astype(o_ref.dtype)


# ---------------------------------------------------------------------------
# Pallas wrappers
# ---------------------------------------------------------------------------
def propagate(adj_bf16, h_bf16, d_norm, *, tile, vmem_limit):
    Np, F = h_bf16.shape
    return pl.pallas_call(
        _propagate_kernel,
        out_shape=jax.ShapeDtypeStruct((Np, F), h_bf16.dtype),
        grid=(Np // tile, Np // tile),
        in_specs=[
            pl.BlockSpec((tile, tile), lambda i, k: (i, k)),    # A block (bf16)
            pl.BlockSpec((tile, F), lambda i, k: (k, 0)),       # H K-block (bf16)
            pl.BlockSpec((tile, 1), lambda i, k: (i, 0)),       # D_norm row tile
        ],
        out_specs=pl.BlockSpec((tile, F), lambda i, k: (i, 0)),
        scratch_shapes=[pltpu.VMEM((tile, F), jnp.float32)],
        compiler_params=_compiler_params(("parallel", "arbitrary"), vmem_limit),
    )(adj_bf16, h_bf16, d_norm)


def gcn_layer(adj_bf16, d_norm, h_bf16, fused_w, fused_b, order, *, fout,
              aggr, act_relu, apply_l2norm, out_dtype, tile, vmem_limit):
    Np, in_store = h_bf16.shape
    num_hops = order + 1
    out_cols = fused_w.shape[1]
    out_store = out_cols if aggr == "concat" else fout
    n_rows = Np // tile
    kern_cfg = dict(fout=fout, aggr=aggr, act_relu=act_relu,
                    apply_l2norm=apply_l2norm)

    if order == 1:
        kern = functools.partial(_gcn_order1_kernel, **kern_cfg)
        return pl.pallas_call(
            kern,
            out_shape=jax.ShapeDtypeStruct((Np, out_store), out_dtype),
            grid=(n_rows, Np // tile),
            in_specs=[
                pl.BlockSpec((tile, in_store), lambda i, k: (i, 0)),  # hop-0 row tile
                pl.BlockSpec((tile, tile), lambda i, k: (i, k)),      # A block (bf16)
                pl.BlockSpec((tile, in_store), lambda i, k: (k, 0)),  # H K-block (bf16)
                pl.BlockSpec((tile, 1), lambda i, k: (i, 0)),         # D_norm row tile
                pl.BlockSpec(fused_w.shape, lambda i, k: (0, 0)),     # block-diag W
                pl.BlockSpec(fused_b.shape, lambda i, k: (0, 0)),     # concat bias
            ],
            out_specs=pl.BlockSpec((tile, out_store), lambda i, k: (i, 0)),
            scratch_shapes=[pltpu.VMEM((tile, in_store), jnp.float32)],
            compiler_params=_compiler_params(("parallel", "arbitrary"),
                                             vmem_limit),
        )(h_bf16, adj_bf16, h_bf16, d_norm, fused_w, fused_b)

    # order == 0 (pure linear) or order >= 2 fallback: materialize the hop
    # features first, then one fused transform call over separate row-tile
    # inputs (no jnp.stack HBM copy).
    # TODO(synk): for order >= 2 the adjacency is re-streamed once per hop; a
    # second accumulator could fuse hop-2 into the layer kernel.
    hops = [h_bf16]
    for _ in range(order):
        hops.append(propagate(adj_bf16, hops[-1], d_norm, tile=tile,
                              vmem_limit=vmem_limit))

    kern = functools.partial(_gcn_transform_kernel, num_hops=num_hops,
                             **kern_cfg)
    in_specs = [pl.BlockSpec((tile, in_store), lambda i: (i, 0))
                for _ in range(num_hops)]
    in_specs += [pl.BlockSpec(fused_w.shape, lambda i: (0, 0)),
                 pl.BlockSpec(fused_b.shape, lambda i: (0, 0))]
    return pl.pallas_call(
        kern,
        out_shape=jax.ShapeDtypeStruct((Np, out_store), out_dtype),
        grid=(n_rows,),
        in_specs=in_specs,
        out_specs=pl.BlockSpec((tile, out_store), lambda i: (i, 0)),
        compiler_params=_compiler_params(("parallel",), vmem_limit),
    )(*hops, fused_w, fused_b)


# ---------------------------------------------------------------------------
# Parameter fusion: per-hop linears -> one block-diagonal, lane-padded weight
# ---------------------------------------------------------------------------
def _build_fused_params(w_hops, b_hops, in_store, in_true, fout, aggr):
    num_hops = len(w_hops)
    if aggr == "concat":
        out_cols = _round_up(num_hops * fout, LANE)   # lane-dense store
    else:
        out_cols = num_hops * fout
    w = jnp.zeros((num_hops * in_store, out_cols), jnp.float32)
    b = jnp.zeros((1, out_cols), jnp.float32)
    for r in range(num_hops):
        w = w.at[r * in_store:r * in_store + in_true,
                 r * fout:(r + 1) * fout].set(w_hops[r])
        b = b.at[0, r * fout:(r + 1) * fout].set(b_hops[r])
    return w.astype(jnp.bfloat16), b


# ---------------------------------------------------------------------------
# Full network
# ---------------------------------------------------------------------------
def gcnnet_forward(adj, d_norm, feat, layers, aggr="concat"):
    """layers: list of dicts {w_hops, b_hops, order, fout, act_relu,
    apply_l2norm} built exactly as GCNNet.__init__ does."""
    N, in_true = feat.shape
    tile_cfg, vmem_limit = _device_config()
    tile = min(tile_cfg, _round_up(N, LANE))
    Np = _round_up(N, tile)
    Fp = _round_up(in_true, LANE)

    # Zero-pad nodes (rows/cols) and feature lanes; padded nodes never
    # contaminate real ones and are sliced off at the end.
    feat = jnp.pad(feat, ((0, Np - N), (0, Fp - in_true)))
    adj = jnp.pad(adj, ((0, Np - N), (0, Np - N)))
    d_norm = jnp.pad(d_norm, ((0, Np - N), (0, 0)))

    # bf16 adjacency is exact for the 0/1 edge weights the reference builds.
    adj_bf16 = adj.astype(jnp.bfloat16)
    h = feat.astype(jnp.bfloat16)
    in_store = Fp

    n_layers = len(layers)
    for li, layer in enumerate(layers):
        num_hops = layer["order"] + 1
        fused_w, fused_b = _build_fused_params(
            layer["w_hops"], layer["b_hops"], in_store, in_true,
            layer["fout"], aggr)
        out_dtype = jnp.float32 if li == n_layers - 1 else jnp.bfloat16
        h = gcn_layer(adj_bf16, d_norm, h, fused_w, fused_b, layer["order"],
                      fout=layer["fout"], aggr=aggr,
                      act_relu=layer["act_relu"],
                      apply_l2norm=layer["apply_l2norm"],
                      out_dtype=out_dtype, tile=tile, vmem_limit=vmem_limit)
        in_true = num_hops * layer["fout"] if aggr == "concat" else layer["fout"]
        in_store = h.shape[1]

    return h[:N, :in_true]


# ---------------------------------------------------------------------------
# Deterministic parameter construction (xavier_normal weights, zero bias)
# ---------------------------------------------------------------------------
def make_layer_params(key, in_dim, out_dim, order):
    # torch Linear weight is [out, in] with xavier_normal_; store W^T per hop.
    keys = jax.random.split(key, order + 1)
    std = (2.0 / (in_dim + out_dim)) ** 0.5
    w_hops = [jnp.transpose(
        jax.random.normal(k, (out_dim, in_dim), jnp.float32) * std)
        for k in keys]
    b_hops = [jnp.zeros((out_dim,), jnp.float32) for _ in keys]
    return w_hops, b_hops


if __name__ == "__main__":
    key = jax.random.PRNGKey(0)
    k_feat, k_adj, k0, k1, k2, k3 = jax.random.split(key, 6)

    # small synthetic graph / features
    N, in_dim, hid_dim, out_dim = 128, 32, 32, 8
    arch = "1-1-0"
    orders = list(map(int, arch.split("-")))
    aggr = "concat"

    feat = jax.random.normal(k_feat, (N, in_dim), jnp.float32)
    # dense 0/1 adjacency, A[v, u] = 1 if edge u->v (avg in-degree ~ 8)
    adj = (jax.random.uniform(k_adj, (N, N)) < (8.0 / N)).astype(jnp.float32)
    in_deg = jnp.sum(adj, axis=1, keepdims=True)
    d_norm = 1.0 / jnp.maximum(in_deg, 1.0)   # ndata['train_D_norm'], [N,1]

    # build GCNNet params exactly as __init__ does
    layers = []
    pre = in_dim
    n_hidden = len(orders)
    for li, (k, order) in enumerate(zip([k0, k1, k2], orders)):
        w_hops, b_hops = make_layer_params(k, pre, hid_dim, order)
        layers.append(dict(w_hops=w_hops, b_hops=b_hops, order=order,
                           fout=hid_dim, act_relu=True,
                           apply_l2norm=(li == n_hidden - 1)))
        pre = ((aggr == "concat") * order + 1) * hid_dim
    w_hops, b_hops = make_layer_params(k3, pre, out_dim, 0)
    layers.append(dict(w_hops=w_hops, b_hops=b_hops, order=0, fout=out_dim,
                       act_relu=False, apply_l2norm=False))

    out = gcnnet_forward(adj, d_norm, feat, layers, aggr=aggr)
    out = jax.block_until_ready(out)
    assert out.shape == (N, out_dim), out.shape
    assert bool(jnp.all(jnp.isfinite(out)))
    print("KERNEL_OK")
</pallas_src>

<mosaic_0001>
module attributes {stable_mosaic.version = 11 : i64} {
  func.func @_gcn_order1_kernel(%arg0: i32, %arg1: i32, %arg2: memref<128x128xbf16, #tpu.memory_space<vmem>>, %arg3: memref<128x128xbf16, #tpu.memory_space<vmem>>, %arg4: memref<128x128xbf16, #tpu.memory_space<vmem>>, %arg5: memref<128x1xf32, #tpu.memory_space<vmem>>, %arg6: memref<256x128xbf16, #tpu.memory_space<vmem>>, %arg7: memref<1x128xf32, #tpu.memory_space<vmem>>, %arg8: memref<128x128xbf16, #tpu.memory_space<vmem>>, %arg9: memref<128x128xf32, #tpu.memory_space<vmem>>) attributes {dimension_semantics = [#tpu.dimension_semantics<parallel>, #tpu.dimension_semantics<arbitrary>], iteration_bounds = array<i64: 1, 1>, scalar_prefetch = 0 : i64, scratch_operands = 1 : i64, tpu.core_type = #tpu.core_type<tc>, window_params = [{transform_indices = @transform_0, window_bounds = array<i64: 128, 128>}, {transform_indices = @transform_1, window_bounds = array<i64: 128, 128>}, {transform_indices = @transform_2, window_bounds = array<i64: 128, 128>}, {transform_indices = @transform_3, window_bounds = array<i64: 128, 1>}, {pipeline_mode = #tpu.pipeline_mode<synchronous>, transform_indices = @transform_4, window_bounds = array<i64: 256, 128>}, {pipeline_mode = #tpu.pipeline_mode<synchronous>, transform_indices = @transform_5, window_bounds = array<i64: 1, 128>}, {transform_indices = @transform_6, window_bounds = array<i64: 128, 128>}]} {
    %c0_i32 = arith.constant 0 : i32
    %0 = arith.cmpi eq, %arg1, %c0_i32 : i32
    %1 = arith.extui %0 : i1 to i32
    %c0_i32_0 = arith.constant 0 : i32
    %2 = arith.cmpi ne, %1, %c0_i32_0 : i32
    scf.if %2 {
      %cst_10 = arith.constant 0.000000e+00 : f32
      %12 = vector.broadcast %cst_10 : f32 to vector<128x128xf32>
      %c0_11 = arith.constant 0 : index
      %c0_12 = arith.constant 0 : index
      %13 = vector.load %arg9[%c0_11, %c0_12] : memref<128x128xf32, #tpu.memory_space<vmem>>, vector<128x128xf32>
      tpu.vector_store %arg9[%c0_11, %c0_12], %12 {strides = array<i32>} : memref<128x128xf32, #tpu.memory_space<vmem>>, vector<128x128xf32>,
    } else {
    }
    %c0 = arith.constant 0 : index
    %c0_1 = arith.constant 0 : index
    %3 = vector.load %arg9[%c0, %c0_1] : memref<128x128xf32, #tpu.memory_space<vmem>>, vector<128x128xf32>
    %c0_2 = arith.constant 0 : index
    %c0_3 = arith.constant 0 : index
    %4 = vector.load %arg3[%c0_2, %c0_3] : memref<128x128xbf16, #tpu.memory_space<vmem>>, vector<128x128xbf16>
    %c0_4 = arith.constant 0 : index
    %c0_5 = arith.constant 0 : index
    %5 = vector.load %arg4[%c0_4, %c0_5] : memref<128x128xbf16, #tpu.memory_space<vmem>>, vector<128x128xbf16>
    %cst = arith.constant dense<0.000000e+00> : vector<128x128xf32>
    %6 = tpu.matmul %4, %5, %cst {dimension_numbers = #tpu.dot_dimension_numbers<[1], [0], [0], [1], [0, 0, 1, 1], [], []>} : vector<128x128xbf16>, vector<128x128xbf16>, vector<128x128xf32> -> vector<128x128xf32>
    %7 = arith.addf %3, %6 : vector<128x128xf32>
    %c0_6 = arith.constant 0 : index
    %c0_7 = arith.constant 0 : index
    %8 = vector.load %arg9[%c0_6, %c0_7] : memref<128x128xf32, #tpu.memory_space<vmem>>, vector<128x128xf32>
    tpu.vector_store %arg9[%c0_6, %c0_7], %7 {strides = array<i32>} : memref<128x128xf32, #tpu.memory_space<vmem>>, vector<128x128xf32>,
    %c0_i32_8 = arith.constant 0 : i32
    %9 = arith.cmpi eq, %arg1, %c0_i32_8 : i32
    %10 = arith.extui %9 : i1 to i32
    %c0_i32_9 = arith.constant 0 : i32
    %11 = arith.cmpi ne, %10, %c0_i32_9 : i32
    scf.if %11 {
      %c0_10 = arith.constant 0 : index
      %c0_11 = arith.constant 0 : index
      %12 = vector.load %arg2[%c0_10, %c0_11] : memref<128x128xbf16, #tpu.memory_space<vmem>>, vector<128x128xbf16>
      %c0_12 = arith.constant 0 : index
      %c0_13 = arith.constant 0 : index
      %13 = vector.load %arg9[%c0_12, %c0_13] : memref<128x128xf32, #tpu.memory_space<vmem>>, vector<128x128xf32>
      %c0_14 = arith.constant 0 : index
      %c0_15 = arith.constant 0 : index
      %14 = vector.load %arg5[%c0_14, %c0_15] : memref<128x1xf32, #tpu.memory_space<vmem>>, vector<128x1xf32>
      %15 = vector.broadcast %14 : vector<128x1xf32> to vector<128x128xf32>
      %16 = arith.mulf %13, %15 : vector<128x128xf32>
      %17 = arith.truncf %16 : vector<128x128xf32> to vector<128x128xbf16>
      %18 = tpu.concatenate %12, %17 in 1 : vector<128x128xbf16>, vector<128x128xbf16> -> vector<128x256xbf16>
      %c0_16 = arith.constant 0 : index
      %c0_17 = arith.constant 0 : index
      %19 = vector.load %arg6[%c0_16, %c0_17] : memref<256x128xbf16, #tpu.memory_space<vmem>>, vector<256x128xbf16>
      %cst_18 = arith.constant dense<0.000000e+00> : vector<128x128xf32>
      %20 = tpu.matmul %18, %19, %cst_18 {dimension_numbers = #tpu.dot_dimension_numbers<[1], [0], [0], [1], [0, 0, 1, 1], [], []>} : vector<128x256xbf16>, vector<256x128xbf16>, vector<128x128xf32> -> vector<128x128xf32>
      %c0_19 = arith.constant 0 : index
      %c0_20 = arith.constant 0 : index
      %21 = vector.load %arg7[%c0_19, %c0_20] : memref<1x128xf32, #tpu.memory_space<vmem>>, vector<1x128xf32>
      %22 = vector.broadcast %21 : vector<1x128xf32> to vector<128x128xf32>
      %23 = arith.addf %20, %22 : vector<128x128xf32>
      %cst_21 = arith.constant 0.000000e+00 : f32
      %24 = vector.broadcast %cst_21 : f32 to vector<128x128xf32>
      %25 = arith.maximumf %23, %24 : vector<128x128xf32>
      %26 = arith.truncf %25 : vector<128x128xf32> to vector<128x128xbf16>
      %c0_22 = arith.constant 0 : index
      %c0_23 = arith.constant 0 : index
      %27 = vector.load %arg8[%c0_22, %c0_23] : memref<128x128xbf16, #tpu.memory_space<vmem>>, vector<128x128xbf16>
      tpu.vector_store %arg8[%c0_22, %c0_23], %26 {strides = array<i32>} : memref<128x128xbf16, #tpu.memory_space<vmem>>, vector<128x128xbf16>,
    } else {
    }
    return
  }
  func.func @transform_0(%arg0: i32, %arg1: i32) -> (i32, i32) {
    %c0_i32 = arith.constant 0 : i32
    %c0_i32_0 = arith.constant 0 : i32
    return %arg0, %c0_i32 : i32, i32
  }
  func.func @transform_1(%arg0: i32, %arg1: i32) -> (i32, i32) {
    %c0_i32 = arith.constant 0 : i32
    return %arg0, %arg1 : i32, i32
  }
  func.func @transform_2(%arg0: i32, %arg1: i32) -> (i32, i32) {
    %c0_i32 = arith.constant 0 : i32
    %c0_i32_0 = arith.constant 0 : i32
    return %arg1, %c0_i32 : i32, i32
  }
  func.func @transform_3(%arg0: i32, %arg1: i32) -> (i32, i32) {
    %c0_i32 = arith.constant 0 : i32
    %c0_i32_0 = arith.constant 0 : i32
    return %arg0, %c0_i32 : i32, i32
  }
  func.func @transform_4(%arg0: i32, %arg1: i32) -> (i32, i32) {
    %c0_i32 = arith.constant 0 : i32
    %c0_i32_0 = arith.constant 0 : i32
    %c0_i32_1 = arith.constant 0 : i32
    return %c0_i32, %c0_i32_0 : i32, i32
  }
  func.func @transform_5(%arg0: i32, %arg1: i32) -> (i32, i32) {
    %c0_i32 = arith.constant 0 : i32
    %c0_i32_0 = arith.constant 0 : i32
    %c0_i32_1 = arith.constant 0 : i32
    return %c0_i32, %c0_i32_0 : i32, i32
  }
  func.func @transform_6(%arg0: i32, %arg1: i32) -> (i32, i32) {
    %c0_i32 = arith.constant 0 : i32
    %c0_i32_0 = arith.constant 0 : i32
    return %arg0, %c0_i32 : i32, i32
  }
}

</mosaic_0001>

<bundles_post_ra>
// kernel: tpu_custom_call.1
= control target key start
LH: loop header
LB: loop body
LE: loop exit
PB: predicated region body
PF: predicated region fallthrough
CT: control target
= control target key end

     0   :  { %11 = vsyncpa [#allocation4], 0  ;;  %s1525_s0 = inlined_call_operand.hbm [shape: bf16[128,128], index: 0, kind: input, shape index: {}]   ;;  %s1526_s1 = inlined_call_operand.hbm [shape: bf16[128,128], index: 1, kind: input, shape index: {}]   ;;  %s1527_s2 = inlined_call_operand.hbm [shape: bf16[128,128], index: 2, kind: input, shape index: {}]   ;;  %s1528_s3 = inlined_call_operand.vmem [shape: f32[128,1], index: 3, kind: input, shape index: {}]   ;;  %s1529_s4 = inlined_call_operand.vmem [shape: bf16[256,128], index: 4, kind: input, shape index: {}]   ;;  %s1530_s5 = inlined_call_operand.vmem [shape: f32[1,128], index: 5, kind: input, shape index: {}]   ;;  %s1531_s6 = inlined_call_operand.hbm [shape: bf16[128,128], index: 6, kind: output, shape index: {}]  }
   0x1   :  { %12 = vsyncpa [#allocation7], 0 }
   0x2   :  { %13 = vsyncpa [#allocation5], 0  ;;  %s1299_s21 = smov [#allocation6]   ;;  %s1300_s23 = smov [#allocation3]  }
   0x3   :  { %s31_s22 = sshll.u32 %s1299_s21, 4  ;;  %s19_s24 = sshll.u32 %s1300_s23, 4  ;;  %s32_s22 = int_to_ptr.vmem [resolvable:$true] %s31_s22  ;;  %s1341_s24 = int_to_ptr.vmem [resolvable:$true] %s19_s24 }
   0x4   :  { %s1205_s27 = scalar_lea.hbm %s1526_s1, 1024 }
   0x5   :  { %p1206_p0 = scmp.ne.s32.totalorder %s1526_s1, %s1205_s27  ;;  %p1209_p1 = scmp.lt.u32.totalorder %s1205_s27, %s1526_s1 }
   0x7   :  { %p1211_p2 = pnand %p1209_p1, %p1206_p0 }
   0x9   :  { %1214 = shalt.err (!%p1211_p2)
}
   0xa   :  { %s1215_s8 = scalar_lea.vmem %s32_s22, 1024  ;;  %p1220_p4 = scmp.lt.s32.totalorder %s32_s22, %s32_s22 }
   0xb   :  { %p1216_p3 = scmp.ne.s32.totalorder %s32_s22, %s1215_s8  ;;  %p1221_p5 = scmp.lt.s32.totalorder %s1215_s8, %s1215_s8 }
   0xd   :  { %p1222_p6 = por %p1221_p5, %p1220_p4 }
   0xf   :  { %p1223_p7 = pnand %p1222_p6, %p1216_p3 }
  0x11   :  { %1226 = shalt.err (!%p1223_p7)
}
  0x12   :  { %s1301_s9 = smov 64   ;;  %s1302_s10 = smov 4  }
  0x13   :  { %37 = dma.hbm_to_vmem [thread:$0]  %s1526_s1, 1024, %s32_s22, [#allocation7], %s1301_s9, %s1301_s9, %s1302_s10  }
  0x14   :  { %s1227_s15 = scalar_lea.hbm %s1525_s0, 1024 }
  0x15   :  { %p1228_p8 = scmp.ne.s32.totalorder %s1525_s0, %s1227_s15  ;;  %p1231_p9 = scmp.lt.u32.totalorder %s1227_s15, %s1525_s0 }
  0x17   :  { %p1233_p10 = pnand %p1231_p9, %p1228_p8 }
  0x19   :  { %1236 = shalt.err (!%p1233_p10)
}
  0x1a   :  { %s1237_s20 = scalar_lea.vmem %s1341_s24, 1024  ;;  %p1242_p12 = scmp.lt.s32.totalorder %s1341_s24, %s1341_s24 }
  0x1b   :  { %p1238_p11 = scmp.ne.s32.totalorder %s1341_s24, %s1237_s20  ;;  %p1243_p13 = scmp.lt.s32.totalorder %s1237_s20, %s1237_s20 }
  0x1d   :  { %p1244_p0 = por %p1243_p13, %p1242_p12 }
  0x1f   :  { %p1245_p1 = pnand %p1244_p0, %p1238_p11 }
  0x21   :  { %1248 = shalt.err (!%p1245_p1)
}
  0x22   :  { %25 = dma.hbm_to_vmem [thread:$0]  %s1525_s0, 1024, %s1341_s24, [#allocation4], %s1301_s9, %s1301_s9, %s1302_s10  }
  0x23   :  { %s1303_s22 = smov [#allocation8]   ;;  %s1249_s27 = scalar_lea.hbm %s1527_s2, 1024 }
  0x24   :  { %s43_s23 = sshll.u32 %s1303_s22, 4  ;;  %p1250_p2 = scmp.ne.s32.totalorder %s1527_s2, %s1249_s27  ;;  %s44_s23 = int_to_ptr.vmem [resolvable:$true] %s43_s23 }
  0x25   :  { %p1253_p3 = scmp.lt.u32.totalorder %s1249_s27, %s1527_s2 }
  0x27   :  { %p1255_p4 = pnand %p1253_p3, %p1250_p2 }
  0x29   :  { %1258 = shalt.err (!%p1255_p4)
}
  0x2a   :  { %s1259_s8 = scalar_lea.vmem %s44_s23, 1024  ;;  %p1264_p6 = scmp.lt.s32.totalorder %s44_s23, %s44_s23 }
  0x2b   :  { %p1260_p5 = scmp.ne.s32.totalorder %s44_s23, %s1259_s8  ;;  %p1265_p7 = scmp.lt.s32.totalorder %s1259_s8, %s1259_s8 }
  0x2d   :  { %p1266_p8 = por %p1265_p7, %p1264_p6 }
  0x2f   :  { %p1267_p9 = pnand %p1266_p8, %p1260_p5 }
  0x31   :  { %1270 = shalt.err (!%p1267_p9)
}
  0x32   :  { %49 = dma.hbm_to_vmem [thread:$0]  %s1527_s2, 1024, %s44_s23, [#allocation7], %s1301_s9, %s1301_s9, %s1302_s10  }
  0x33   :  { %1293 = dma.done.wait [#allocation4], 1024  }
  0x34   :  { %1294 = vsyncadd [#allocation4], 4294966272 }
  0x35   :  { %1295 = dma.done.wait [#allocation7], 2048  }
  0x36   :  { %1296 = vsyncadd [#allocation7], 4294965248  ;;  %v1304_v0 = vmov 0   ;;  %v1165_v1 = vld [vmem:[#allocation8] sm:$0xff]   ;;  %v1166_v2 = vld [vmem:[#allocation8 + $0x8] sm:$0xff]  }
  0x37   :  { %1163 = vset.pattern.permute.xlu0 %v1304_v0  ;;  %1164 = vset.pattern.permute.xlu1 %v1304_v0  ;;  %v1167_v3 = vld [vmem:[#allocation8 + $0x10] sm:$0xff]   ;;  %v1168_v4 = vld [vmem:[#allocation8 + $0x18] sm:$0xff]   ;;  %v1173_v5 = vld [vmem:[#allocation6] sm:$0xff]  }
  0x38   :  { %1108 = vmatprep.subr.bf16.mxu0 %v1165_v1  ;;  %1124 = vmatprep.mubr.bf16.mxu0 %v1173_v5  ;;  %v1169_v6 = vld [vmem:[#allocation8 + $0x20] sm:$0xff]   ;;  %v1170_v7 = vld [vmem:[#allocation8 + $0x28] sm:$0xff]   ;;  %v400_v9 = vld [vmem:[%s1528_s3 + $0x30] sm:$0xff] }
  0x39   :  { %1109 = vmatpush3.bf16.msra.mxu0 %v1165_v1  ;;  %v398_v8 = vld [vmem:[%s1528_s3 + $0x20] sm:$0xff]  ;;  %442 = vperm.xlu1 %1164, %v400_v9   ;;  %v399_v10 = vld [vmem:[%s1528_s3 + $0x28] sm:$0xff]  ;;  %v401_v11 = vld [vmem:[%s1528_s3 + $0x38] sm:$0xff] }
  0x3a   :  { %1110 = vmatprep.subr.bf16.mxu0 %v1166_v2  ;;  %432 = vperm.xlu0 %1163, %v398_v8   ;;  %v1171_v12 = vld [vmem:[#allocation8 + $0x30] sm:$0xff]   ;;  %v402_v13 = vld [vmem:[%s1528_s3 + $0x40] sm:$0xff]  ;;  %v403_v14 = vld [vmem:[%s1528_s3 + $0x48] sm:$0xff] }
  0x3b   :  { %v1181_v15 = vld [vmem:[%s1529_s4 + $0x40] sm:$0xff]   ;;  %v1172_v16 = vld [vmem:[#allocation8 + $0x38] sm:$0xff]   ;;  %v404_v17 = vld [vmem:[%s1528_s3 + $0x50] sm:$0xff] }
  0x3c   :  { %v1182_v18 = vld [vmem:[%s1529_s4] sm:$0xff]   ;;  %1140 = vmatprep.subr.bf16.mxu1 %v1181_v15  ;;  %v1183_v19 = vld [vmem:[%s1529_s4 + $0x48] sm:$0xff]   ;;  %v405_v20 = vld [vmem:[%s1528_s3 + $0x58] sm:$0xff] }
  0x3d   :  { %1111 = vmatpush3.bf16.msra.mxu0 %v1166_v2  ;;  %447 = vperm.xlu1 %1164, %v401_v11   ;;  %v1174_v21 = vld [vmem:[#allocation6 + $0x8] sm:$0xff]   ;;  %v394_v22 = vld [vmem:[%s1528_s3] sm:$0xff]  ;;  %v1175_v25 = vld [vmem:[#allocation6 + $0x10] sm:$0xff]  }
  0x3e   :  { %1112 = vmatprep.subr.bf16.mxu0 %v1167_v3  ;;  %437 = vperm.xlu0 %1163, %v399_v10   ;;  %v395_v23 = vld [vmem:[%s1528_s3 + $0x8] sm:$0xff]  ;;  %v1185_v26 = vld [vmem:[%s1529_s4 + $0x50] sm:$0xff]   ;;  %v406_v27 = vld [vmem:[%s1528_s3 + $0x60] sm:$0xff] }
  0x3f   :  { %1148 = vmatpush3.bf16.msra.mxu1 %v1182_v18  ;;  %v1184_v24 = vld [vmem:[%s1529_s4 + $0x8] sm:$0xff]   ;;  %v1186_v29 = vld [vmem:[%s1529_s4 + $0x10] sm:$0xff]   ;;  %v1187_v30 = vld [vmem:[%s1529_s4 + $0x58] sm:$0xff]  }
  0x40   :  { %1141 = vmatprep.subr.bf16.mxu1 %v1183_v19  ;;  %v407_v28 = vld [vmem:[%s1528_s3 + $0x68] sm:$0xff]  ;;  %v1176_v31 = vld [vmem:[#allocation6 + $0x18] sm:$0xff]   ;;  %v396_v32 = vld [vmem:[%s1528_s3 + $0x10] sm:$0xff] }
  0x41   :  { %1113 = vmatpush3.bf16.msra.mxu0 %v1167_v3  ;;  %457 = vperm.xlu1 %1164, %v403_v14   ;;  %v397_v33 = vld [vmem:[%s1528_s3 + $0x18] sm:$0xff]  ;;  %v1189_v35 = vld [vmem:[%s1529_s4 + $0x60] sm:$0xff]   ;;  %v408_v38 = vld [vmem:[%s1528_s3 + $0x70] sm:$0xff] }
  0x42   :  { %1114 = vmatprep.subr.bf16.mxu0 %v1168_v4  ;;  %452 = vperm.xlu0 %1163, %v402_v13   ;;  %v1188_v34 = vld [vmem:[%s1529_s4 + $0x18] sm:$0xff]   ;;  %v1177_v36 = vld [vmem:[#allocation6 + $0x20] sm:$0xff]   ;;  %v1191_v40 = vld [vmem:[%s1529_s4 + $0x68] sm:$0xff]  }
  0x43   :  { %1149 = vmatpush3.bf16.msra.mxu1 %v1184_v24  ;;  %v1190_v37 = vld [vmem:[%s1529_s4 + $0x20] sm:$0xff]   ;;  %v409_v39 = vld [vmem:[%s1528_s3 + $0x78] sm:$0xff]  ;;  %v1192_v41 = vld [vmem:[%s1529_s4 + $0x28] sm:$0xff]  }
  0x44   :  { %1142 = vmatprep.subr.bf16.mxu1 %v1185_v26  ;;  %v1178_v42 = vld [vmem:[#allocation6 + $0x28] sm:$0xff]   ;;  %v1179_v43 = vld [vmem:[#allocation6 + $0x30] sm:$0xff]   ;;  %v1180_v44 = vld [vmem:[#allocation6 + $0x38] sm:$0xff]  }
  0x45   :  { %1115 = vmatpush3.bf16.msra.mxu0 %v1168_v4  ;;  %467 = vperm.xlu1 %1164, %v405_v20   ;;  %v1193_v45 = vld [vmem:[%s1529_s4 + $0x70] sm:$0xff]   ;;  %v1195_v47 = vld [vmem:[%s1529_s4 + $0x78] sm:$0xff]   ;;  %v1197_v8 = vld [vmem:[#allocation3] sm:$0xff]  }
  0x46   :  { %1116 = vmatprep.subr.bf16.mxu0 %v1169_v6  ;;  %462 = vperm.xlu0 %1163, %v404_v17   ;;  %v1194_v46 = vld [vmem:[%s1529_s4 + $0x30] sm:$0xff]   ;;  %v1196_v48 = vld [vmem:[%s1529_s4 + $0x38] sm:$0xff]   ;;  %v1203_v20 = vld [vmem:[#allocation3 + $0x8] sm:$0xff]  }
  0x47   :  { %1150 = vmatpush3.bf16.msra.mxu1 %v1186_v29 }
  0x48   :  { %1143 = vmatprep.subr.bf16.mxu1 %v1187_v30 }
  0x49   :  { %1117 = vmatpush3.bf16.msra.mxu0 %v1169_v6  ;;  %417 = vperm.xlu1 %1164, %v395_v23  }
  0x4a   :  { %1118 = vmatprep.subr.bf16.mxu0 %v1170_v7  ;;  %412 = vperm.xlu0 %1163, %v394_v22  }
  0x4b   :  { %1151 = vmatpush3.bf16.msra.mxu1 %v1188_v34 }
  0x4c   :  { %1144 = vmatprep.subr.bf16.mxu1 %v1189_v35 }
  0x4d   :  { %1119 = vmatpush3.bf16.msra.mxu0 %v1170_v7  ;;  %477 = vperm.xlu1 %1164, %v407_v28  }
  0x4e   :  { %1120 = vmatprep.subr.bf16.mxu0 %v1171_v12  ;;  %472 = vperm.xlu0 %1163, %v406_v27  }
  0x4f   :  { %1152 = vmatpush3.bf16.msra.mxu1 %v1190_v37 }
  0x50   :  { %1145 = vmatprep.subr.bf16.mxu1 %v1191_v40 }
  0x51   :  { %1121 = vmatpush3.bf16.msra.mxu0 %v1171_v12  ;;  %427 = vperm.xlu1 %1164, %v397_v33  }
  0x52   :  { %1122 = vmatprep.subr.bf16.mxu0 %v1172_v16  ;;  %422 = vperm.xlu0 %1163, %v396_v32  }
  0x53   :  { %1153 = vmatpush3.bf16.msra.mxu1 %v1192_v41 }
  0x54   :  { %1146 = vmatprep.subr.bf16.mxu1 %v1193_v45 }
  0x55   :  { %1123 = vmatpush3.bf16.msra.mxu0 %v1172_v16  ;;  %487 = vperm.xlu1 %1164, %v409_v39  }
  0x56   :  { %1044 = vmatprep.subr.bf16.mxu0 %v1181_v15  ;;  %482 = vperm.xlu0 %1163, %v408_v38  }
  0x57   :  { %1154 = vmatpush3.bf16.msra.mxu1 %v1194_v46 }
  0x58   :  { %1125 = vmatmul.mubr.bf16.vlgmr.msra.gmra.mrb[0].mxu0 %v1174_v21  ;;  %1147 = vmatprep.subr.bf16.mxu1 %v1195_v47 }
  0x59   :  { %1128 = vmatprep.mubr.bf16.mxu0 %v1175_v25  ;;  %1045 = vmatpush3.bf16.msra.mxu0 %v1182_v18 }
  0x5a   :  { %1046 = vmatprep.subr.bf16.mxu0 %v1183_v19  ;;  %v1198_v19 = vld [vmem:[#allocation3 + $0x10] sm:$0xff]  }
  0x5b   :  { %1155 = vmatpush3.bf16.msra.mxu1 %v1196_v48 }
  0x5d   :  { %1047 = vmatpush3.bf16.msra.mxu0 %v1184_v24 }
  0x5e   :  { %1048 = vmatprep.subr.bf16.mxu0 %v1185_v26 }
  0x60   :  { %1129 = vmatmul.mubr.bf16.gmra.mrb[4].mxu0 %v1176_v31  ;;  %v1199_v31 = vld [vmem:[#allocation3 + $0x18] sm:$0xff]  }
  0x61   :  { %1132 = vmatprep.mubr.bf16.mxu0 %v1177_v36  ;;  %1049 = vmatpush3.bf16.msra.mxu0 %v1186_v29 }
  0x62   :  { %1050 = vmatprep.subr.bf16.mxu0 %v1187_v30 }
  0x65   :  { %1051 = vmatpush3.bf16.msra.mxu0 %v1188_v34 }
  0x66   :  { %1052 = vmatprep.subr.bf16.mxu0 %v1189_v35 }
  0x68   :  { %1133 = vmatmul.mubr.bf16.gmra.mrb[8].mxu0 %v1178_v42 }
  0x69   :  { %1136 = vmatprep.mubr.bf16.mxu0 %v1179_v43  ;;  %1053 = vmatpush3.bf16.msra.mxu0 %v1190_v37 }
  0x6a   :  { %1054 = vmatprep.subr.bf16.mxu0 %v1191_v40 }
  0x6d   :  { %1055 = vmatpush3.bf16.msra.mxu0 %v1192_v41 }
  0x6e   :  { %1056 = vmatprep.subr.bf16.mxu0 %v1193_v45 }
  0x70   :  { %1137 = vmatmul.mubr.bf16.gmra.mrb[12].mxu0 %v1180_v44  ;;  %v1200_v44 = vld [vmem:[#allocation3 + $0x20] sm:$0xff]  }
  0x71   :  { %1057 = vmatpush3.bf16.msra.mxu0 %v1194_v46  ;;  %v1201_v46 = vld [vmem:[#allocation3 + $0x28] sm:$0xff]  }
  0x72   :  { %1058 = vmatprep.subr.bf16.mxu0 %v1195_v47  ;;  %v1202_v47 = vld [vmem:[#allocation3 + $0x30] sm:$0xff]  }
  0x75   :  { %1059 = vmatpush3.bf16.msra.mxu0 %v1196_v48  ;;  %v1204_v48 = vld [vmem:[#allocation3 + $0x38] sm:$0xff]  }
  0xb8   :  { %v443_v50 = vpop.permute.xlu1 %442 }
  0xb9   :  { %v433_v49 = vpop.permute.xlu0 %432 }
  0xbc   :  { %v448_v52 = vpop.permute.xlu1 %447 }
  0xbd   :  { %v438_v51 = vpop.permute.xlu0 %437 }
  0xc0   :  { %v458_v54 = vpop.permute.xlu1 %457 }
  0xc1   :  { %v453_v53 = vpop.permute.xlu0 %452 }
  0xc4   :  { %v468_v56 = vpop.permute.xlu1 %467 }
  0xc5   :  { %v463_v55 = vpop.permute.xlu0 %462 }
  0xc8   :  { %v418_v58 = vpop.permute.xlu1 %417 }
  0xc9   :  { %v413_v57 = vpop.permute.xlu0 %412 }
  0xcc   :  { %v478_v60 = vpop.permute.xlu1 %477 }
  0xcd   :  { %v473_v59 = vpop.permute.xlu0 %472 }
  0xd0   :  { %v428_v63 = vpop.permute.xlu1 %427 }
  0xd1   :  { %v423_v61 = vpop.permute.xlu0 %422 }
  0xd4   :  { %v488_v36 = vpop.permute.xlu1 %487 }
  0xd5   :  { %v483_v34 = vpop.permute.xlu0 %482 }
 0x12b   :  { %v1126_v62 = vpop.f32.mrb[0].mxu0 }
 0x12c   :  { %v264_v0 = vpop.f32.mrb[1].mxu0  ;;  %v492_v2 = vmul.f32 %v1126_v62, %v423_v61 }
 0x12d   :  { %v1127_v1 = vpop.f32.mrb[2].mxu0  ;;  %v490_v5 = vmul.f32 %v413_v57, %v264_v0 }
 0x12e   :  { %v493_v3 = vmul.f32 %v1127_v1, %v428_v63  ;;  %v267_v4 = vpop.f32.mrb[3].mxu0 }
 0x12f   :  { %v491_v6 = vmul.f32 %v418_v58, %v267_v4 }
 0x130   :  { %v507_v7 = vpack.c.bf16 %v493_v3, %v492_v2 }
 0x131   :  { %v506_v9 = vpack.c.bf16 %v491_v6, %v490_v5 }
 0x133   :  { %v1130_v10 = vpop.f32.mrb[4].mxu0  ;;  %729 = vmatprep.mubr.bf16.mxu0 %v506_v9 }
 0x134   :  { %v280_v11 = vpop.f32.mrb[5].mxu0  ;;  %730 = vmatmul.mubr.bf16.vlgmr.msra.gmra.mrb[16].mxu0 %v1197_v8  ;;  %v496_v13 = vmul.f32 %v1130_v10, %v443_v50 }
 0x135   :  { %v1131_v12 = vpop.f32.mrb[6].mxu0  ;;  %737 = vmatprep.mubr.bf16.mxu0 %v507_v7  ;;  %v494_v16 = vmul.f32 %v433_v49, %v280_v11 }
 0x136   :  { %v497_v14 = vmul.f32 %v1131_v12, %v448_v52  ;;  %v283_v15 = vpop.f32.mrb[7].mxu0 }
 0x137   :  { %v495_v17 = vmul.f32 %v438_v51, %v283_v15 }
 0x138   :  { %v509_v18 = vpack.c.bf16 %v497_v14, %v496_v13 }
 0x139   :  { %v508_v21 = vpack.c.bf16 %v495_v17, %v494_v16 }
 0x13b   :  { %v1134_v22 = vpop.f32.mrb[8].mxu0  ;;  %745 = vmatprep.mubr.bf16.mxu1 %v508_v21 }
 0x13c   :  { %v296_v23 = vpop.f32.mrb[9].mxu0  ;;  %746 = vmatmul.mubr.bf16.vlgmr.msra.gmra.mrb[0].mxu1 %v1198_v19  ;;  %738 = vmatmul.mubr.bf16.gmra.mrb[20].mxu0 %v1203_v20  ;;  %v500_v25 = vmul.f32 %v1134_v22, %v463_v55 }
 0x13d   :  { %v1135_v24 = vpop.f32.mrb[10].mxu0  ;;  %753 = vmatprep.mubr.bf16.mxu1 %v509_v18  ;;  %v498_v28 = vmul.f32 %v453_v53, %v296_v23  ;;  %v1492_v53 = vld [vmem:[%s1530_s5] ss:$0 sm:$0xff]  ;;  %s1305_s5 = smov [#allocation9]  }
 0x13e   :  { %v501_v26 = vmul.f32 %v1135_v24, %v468_v56  ;;  %v299_v27 = vpop.f32.mrb[11].mxu0  ;;  %s895_s23 = sshll.u32 %s1305_s5, 4  ;;  %s896_s23 = int_to_ptr.vmem [resolvable:$true] %s895_s23 }
 0x13f   :  { %v499_v29 = vmul.f32 %v458_v54, %v299_v27  ;;  %s1271_s25 = scalar_lea.vmem %s896_s23, 1024  ;;  %p1276_p11 = scmp.lt.s32.totalorder %s896_s23, %s896_s23 }
 0x140   :  { %v511_v30 = vpack.c.bf16 %v501_v26, %v500_v25  ;;  %p1272_p10 = scmp.ne.s32.totalorder %s896_s23, %s1271_s25  ;;  %p1277_p12 = scmp.lt.s32.totalorder %s1271_s25, %s1271_s25 }
 0x141   :  { %v510_v32 = vpack.c.bf16 %v499_v29, %v498_v28 }
 0x142   :  { %p1278_p13 = por %p1277_p12, %p1276_p11 }
 0x143   :  { %v1138_v33 = vpop.f32.mrb[12].mxu0 }
 0x144   :  { %v312_v35 = vpop.f32.mrb[13].mxu0  ;;  %754 = vmatmul.mubr.bf16.gmra.mrb[4].mxu1 %v1199_v31  ;;  %v504_v38 = vmul.f32 %v1138_v33, %v483_v34  ;;  %p1279_p0 = pnand %p1278_p13, %p1272_p10 }
 0x145   :  { %v1139_v37 = vpop.f32.mrb[14].mxu0  ;;  %761 = vmatprep.mubr.bf16.mxu1 %v510_v32  ;;  %v502_v41 = vmul.f32 %v473_v59, %v312_v35 }
 0x146   :  { %v505_v39 = vmul.f32 %v1139_v37, %v488_v36  ;;  %v315_v40 = vpop.f32.mrb[15].mxu0 }
 0x147   :  { %v503_v42 = vmul.f32 %v478_v60, %v315_v40 }
 0x148   :  { %v513_v43 = vpack.c.bf16 %v505_v39, %v504_v38 }
 0x149   :  { %v512_v45 = vpack.c.bf16 %v503_v42, %v502_v41 }
 0x14c   :  { %762 = vmatmul.mubr.bf16.gmra.mrb[8].mxu1 %v1200_v44 }
 0x14d   :  { %769 = vmatprep.mubr.bf16.mxu1 %v511_v30 }
 0x154   :  { %770 = vmatmul.mubr.bf16.gmra.mrb[12].mxu1 %v1201_v46 }
 0x155   :  { %777 = vmatprep.mubr.bf16.mxu1 %v512_v45 }
 0x15c   :  { %778 = vmatmul.mubr.bf16.gmra.mrb[16].mxu1 %v1202_v47 }
 0x15d   :  { %785 = vmatprep.mubr.bf16.mxu1 %v513_v43 }
 0x164   :  { %786 = vmatmul.mubr.bf16.gmra.mrb[20].mxu1 %v1204_v48 }
 0x207   :  { %v1060_v49 = vpop.f32.mrb[16].mxu0 }
 0x208   :  { %v1061_v50 = vpop.f32.mrb[17].mxu0 }
 0x209   :  { %v1062_v51 = vadd.f32 %v1061_v50, %v1060_v49  ;;  %v1063_v52 = vpop.f32.mrb[18].mxu0 }
 0x20a   :  { %v1064_v54 = vpop.f32.mrb[19].mxu0 }
 0x20b   :  { %v732_v55 = vadd.f32 %v1062_v51, %v1492_v53  ;;  %v1065_v56 = vadd.f32 %v1064_v54, %v1063_v52 }
 0x20d   :  { %v794_v57 = vmax.f32 %v732_v55, 0.0  ;;  %v735_v58 = vadd.f32 %v1065_v56, %v1492_v53 }
 0x20f   :  { %v1072_v59 = vpop.f32.mrb[0].mxu1  ;;  %v795_v60 = vmax.f32 %v735_v58, 0.0  ;;  %v1066_v61 = vpop.f32.mrb[20].mxu0 }
 0x210   :  { %v1073_v62 = vpop.f32.mrb[1].mxu1  ;;  %v1067_v63 = vpop.f32.mrb[21].mxu0 }
 0x211   :  { %v1074_v0 = vadd.f32 %v1073_v62, %v1072_v59  ;;  %v1075_v1 = vpop.f32.mrb[2].mxu1  ;;  %v984_v2 = vpack.c.bf16 %v795_v60, %v794_v57  ;;  %v1068_v3 = vadd.f32 %v1067_v63, %v1066_v61  ;;  %v1069_v4 = vpop.f32.mrb[22].mxu0 }
 0x212   :  { %v1076_v5 = vpop.f32.mrb[3].mxu1  ;;  %v1070_v6 = vpop.f32.mrb[23].mxu0 }
 0x213   :  { %v748_v7 = vadd.f32 %v1074_v0, %v1492_v53  ;;  %v1077_v8 = vadd.f32 %v1076_v5, %v1075_v1  ;;  %985 = vst [vmem:[#allocation9] sm:$0xff] %v984_v2   ;;  %v740_v9 = vadd.f32 %v1068_v3, %v1492_v53  ;;  %v1071_v10 = vadd.f32 %v1070_v6, %v1069_v4 }
 0x215   :  { %v751_v11 = vadd.f32 %v1077_v8, %v1492_v53  ;;  %v796_v12 = vmax.f32 %v740_v9, 0.0  ;;  %v743_v13 = vadd.f32 %v1071_v10, %v1492_v53  ;;  %v798_v14 = vmax.f32 %v748_v7, 0.0 }
 0x217   :  { %v799_v15 = vmax.f32 %v751_v11, 0.0  ;;  %v1078_v16 = vpop.f32.mrb[4].mxu1  ;;  %v797_v17 = vmax.f32 %v743_v13, 0.0 }
 0x218   :  { %v1079_v18 = vpop.f32.mrb[5].mxu1 }
 0x219   :  { %v994_v19 = vpack.c.bf16 %v799_v15, %v798_v14  ;;  %v1080_v20 = vadd.f32 %v1079_v18, %v1078_v16  ;;  %v1081_v21 = vpop.f32.mrb[6].mxu1  ;;  %v989_v22 = vpack.c.bf16 %v797_v17, %v796_v12 }
 0x21a   :  { %v1082_v23 = vpop.f32.mrb[7].mxu1 }
 0x21b   :  { %1022 = vst [vmem:[#allocation9 + $0x10] sm:$0xff] %v994_v19   ;;  %v756_v24 = vadd.f32 %v1080_v20, %v1492_v53  ;;  %v1083_v25 = vadd.f32 %v1082_v23, %v1081_v21  ;;  %1021 = vst [vmem:[#allocation9 + $0x8] sm:$0xff] %v989_v22  }
 0x21d   :  { %v759_v26 = vadd.f32 %v1083_v25, %v1492_v53  ;;  %v800_v27 = vmax.f32 %v756_v24, 0.0 }
 0x21f   :  { %v801_v28 = vmax.f32 %v759_v26, 0.0  ;;  %v1084_v29 = vpop.f32.mrb[8].mxu1 }
 0x220   :  { %v1085_v30 = vpop.f32.mrb[9].mxu1 }
 0x221   :  { %v999_v31 = vpack.c.bf16 %v801_v28, %v800_v27  ;;  %v1086_v32 = vadd.f32 %v1085_v30, %v1084_v29  ;;  %v1087_v33 = vpop.f32.mrb[10].mxu1 }
 0x222   :  { %v1088_v34 = vpop.f32.mrb[11].mxu1 }
 0x223   :  { %1023 = vst [vmem:[#allocation9 + $0x18] sm:$0xff] %v999_v31   ;;  %v764_v35 = vadd.f32 %v1086_v32, %v1492_v53  ;;  %v1089_v36 = vadd.f32 %v1088_v34, %v1087_v33 }
 0x225   :  { %v767_v37 = vadd.f32 %v1089_v36, %v1492_v53  ;;  %v802_v38 = vmax.f32 %v764_v35, 0.0 }
 0x227   :  { %v803_v39 = vmax.f32 %v767_v37, 0.0  ;;  %v1090_v40 = vpop.f32.mrb[12].mxu1 }
 0x228   :  { %v1091_v41 = vpop.f32.mrb[13].mxu1 }
 0x229   :  { %v1004_v42 = vpack.c.bf16 %v803_v39, %v802_v38  ;;  %v1092_v43 = vadd.f32 %v1091_v41, %v1090_v40  ;;  %v1093_v44 = vpop.f32.mrb[14].mxu1 }
 0x22a   :  { %v1094_v45 = vpop.f32.mrb[15].mxu1 }
 0x22b   :  { %1024 = vst [vmem:[#allocation9 + $0x20] sm:$0xff] %v1004_v42   ;;  %v772_v46 = vadd.f32 %v1092_v43, %v1492_v53  ;;  %v1095_v47 = vadd.f32 %v1094_v45, %v1093_v44 }
 0x22d   :  { %v775_v48 = vadd.f32 %v1095_v47, %v1492_v53  ;;  %v804_v49 = vmax.f32 %v772_v46, 0.0 }
 0x22f   :  { %v805_v50 = vmax.f32 %v775_v48, 0.0  ;;  %v1096_v51 = vpop.f32.mrb[16].mxu1 }
 0x230   :  { %v1097_v52 = vpop.f32.mrb[17].mxu1 }
 0x231   :  { %v1009_v54 = vpack.c.bf16 %v805_v50, %v804_v49  ;;  %v1098_v55 = vadd.f32 %v1097_v52, %v1096_v51  ;;  %v1099_v56 = vpop.f32.mrb[18].mxu1 }
 0x232   :  { %v1100_v57 = vpop.f32.mrb[19].mxu1 }
 0x233   :  { %1025 = vst [vmem:[#allocation9 + $0x28] sm:$0xff] %v1009_v54   ;;  %v780_v58 = vadd.f32 %v1098_v55, %v1492_v53  ;;  %v1101_v59 = vadd.f32 %v1100_v57, %v1099_v56 }
 0x235   :  { %v783_v60 = vadd.f32 %v1101_v59, %v1492_v53  ;;  %v806_v61 = vmax.f32 %v780_v58, 0.0 }
 0x237   :  { %v807_v62 = vmax.f32 %v783_v60, 0.0  ;;  %v1102_v63 = vpop.f32.mrb[20].mxu1 }
 0x238   :  { %v1103_v0 = vpop.f32.mrb[21].mxu1 }
 0x239   :  { %v1014_v1 = vpack.c.bf16 %v807_v62, %v806_v61  ;;  %v1104_v2 = vadd.f32 %v1103_v0, %v1102_v63  ;;  %v1105_v3 = vpop.f32.mrb[22].mxu1 }
 0x23a   :  { %v1106_v4 = vpop.f32.mrb[23].mxu1 }
 0x23b   :  { %1026 = vst [vmem:[#allocation9 + $0x30] sm:$0xff] %v1014_v1   ;;  %v788_v5 = vadd.f32 %v1104_v2, %v1492_v53  ;;  %v1107_v6 = vadd.f32 %v1106_v4, %v1105_v3 }
 0x23d   :  { %v791_v7 = vadd.f32 %v1107_v6, %v1492_v53  ;;  %v808_v8 = vmax.f32 %v788_v5, 0.0 }
 0x23f   :  { %v809_v9 = vmax.f32 %v791_v7, 0.0 }
 0x241   :  { %v1019_v10 = vpack.c.bf16 %v809_v9, %v808_v8 }
 0x243   :  { %1027 = vst [vmem:[#allocation9 + $0x38] sm:$0xff] %v1019_v10  }
 0x244   :  { %1282 = shalt.err (!%p1279_p0)
}
 0x245   :  { %s1283_s28 = scalar_lea.hbm %s1531_s6, 1024 }
 0x246   :  { %p1284_p1 = scmp.ne.s32.totalorder %s1531_s6, %s1283_s28  ;;  %p1287_p2 = scmp.lt.u32.totalorder %s1283_s28, %s1531_s6 }
 0x248   :  { %p1289_p3 = pnand %p1287_p2, %p1284_p1 }
 0x24a   :  { %1292 = shalt.err (!%p1289_p3)
}
 0x24b   :  { %901 = dma.vmem_to_hbm [thread:$0]  %s896_s23, 1024, %s1531_s6, [#allocation5], %s1301_s9, %s1301_s9, %s1302_s10  }
 0x24c   :  { %1297 = dma.done.wait [#allocation5], 1024  }
 0x24d   :  { %1298 = vsyncadd [#allocation5], 4294966272 }
 0x24e   :  { %905 = vsyncpa [#allocation4], 1 }
 0x24f   :  { %906 = vsyncpa [#allocation7], 1 }
 0x250   :  { %907 = vsyncpa [#allocation5], 1 }

</bundles_post_ra>
